<compile_context>
chip_gen: v6e
topology: v6e:2x2x1
jax: 0.10.0
libtpu: 0.0.40
codegen_flags: <defaults>
</compile_context>

<pallas_src>
import functools

import jax
import jax.numpy as jnp
from jax import lax
from jax.experimental import pallas as pl
from jax.experimental.pallas import tpu as pltpu


def _round_up(v, m):
    return ((v + m - 1) // m) * m


# Conservative per-kernel VMEM budget/limit: safe on v7x (64 MiB physical) and v5e/v6e.
_VMEM_TILE_BUDGET = 40 * 1024 * 1024
_VMEM_LIMIT_BYTES = 48 * 1024 * 1024


def _pick_row_tile(row_tile, n_rows, d, h, x_bytes, out_bytes, w_bytes):
    """Largest multiple-of-8 row tile <= row_tile whose VMEM estimate fits budget."""
    tb = _round_up(min(row_tile, max(n_rows, 8)), 8)
    # Resident (constant index_map) operands; the auto-pipeliner still allocates two
    # buffers for them, so count them twice.
    fixed = 2 * (2 * d * h * w_bytes + (2 * d + 2 * h) * 4)
    while True:
        io = 2 * tb * d * (x_bytes + out_bytes)      # double-buffered in/out tiles
        tmp = tb * (2 * d + 2 * h) * 4               # f32 intermediates (x, xn, h, y)
        if fixed + io + tmp <= _VMEM_TILE_BUDGET or tb <= 8:
            return tb
        tb = max(8, _round_up(tb // 2, 8))


def _mixer_kernel(x_ref, g_ref, be_ref, w1_ref, b1_ref, w2_ref, b2_ref, o_ref,
                  *, eps, inv_d):
    # x_ref : (TB, D) row tile, native dtype          o_ref : (TB, D) output tile
    # g_ref, be_ref, b2_ref : (1, D) f32               b1_ref: (1, H) f32
    # w1_ref: (D, H) bf16    w2_ref: (H, D) bf16       (resident across grid steps)
    x = x_ref[...].astype(jnp.float32)                           # (TB, D)

    # LayerNorm: fused single-pass statistics, rsqrt (EUP) instead of sqrt+divide.
    mean = jnp.sum(x, axis=-1, keepdims=True) * inv_d
    ex2 = jnp.sum(x * x, axis=-1, keepdims=True) * inv_d
    var = jnp.maximum(ex2 - mean * mean, 0.0)
    inv = lax.rsqrt(var + eps)
    xn = (x - mean) * inv * g_ref[...] + be_ref[...]             # (TB, D) f32

    # MLP: Linear -> ReLU -> Linear.  bf16 MXU matmuls, f32 accumulation.
    h = jnp.dot(xn.astype(w1_ref.dtype), w1_ref[...],
                preferred_element_type=jnp.float32) + b1_ref[...]
    h = jnp.maximum(h, 0.0)
    y = jnp.dot(h.astype(w2_ref.dtype), w2_ref[...],
                preferred_element_type=jnp.float32) + b2_ref[...]

    # Residual (pre-LN x), cast to the output dtype at the store.
    o_ref[...] = (x + y).astype(o_ref.dtype)


def prepare_feature_mixer_params(gamma, beta, w1, b1, w2, b2,
                                 *, matmul_dtype=jnp.bfloat16):
    """One-time parameter prep (transpose + cast), hoisted out of the call path.

    PyTorch layout: w1 (H, D), b1 (H,), w2 (D, H), b2 (D,), gamma/beta (D,).
    """
    d = gamma.shape[0]
    h = w1.shape[0]
    return dict(
        gamma=jnp.asarray(gamma, jnp.float32).reshape(1, d),
        beta=jnp.asarray(beta, jnp.float32).reshape(1, d),
        w1t=jnp.asarray(w1).T.astype(matmul_dtype),              # (D, H)
        b1=jnp.asarray(b1, jnp.float32).reshape(1, h),
        w2t=jnp.asarray(w2).T.astype(matmul_dtype),              # (H, D)
        b2=jnp.asarray(b2, jnp.float32).reshape(1, d),
    )


def feature_mixer_forward(x, params, *, eps=1e-5, row_tile=512):
    """FeatureMixerLayer forward: x + Linear2(ReLU(Linear1(LayerNorm(x)))).

    x: (..., D), any leading shape, kept in its native dtype end-to-end.
    params: output of prepare_feature_mixer_params().
    """
    orig_shape = x.shape
    d = orig_shape[-1]
    h = params["b1"].shape[-1]

    xr = x.reshape(-1, d)                    # row view, native dtype (no HBM cast pass)
    n_rows = xr.shape[0]

    tb = _pick_row_tile(row_tile, n_rows, d, h,
                        xr.dtype.itemsize, xr.dtype.itemsize,
                        params["w1t"].dtype.itemsize)

    out = pl.pallas_call(
        functools.partial(_mixer_kernel, eps=eps, inv_d=1.0 / d),
        out_shape=jax.ShapeDtypeStruct((n_rows, d), xr.dtype),
        grid=(pl.cdiv(n_rows, tb),),         # OOB rows of the last block masked on store
        in_specs=[
            pl.BlockSpec((tb, d), lambda i: (i, 0)),   # x rows  (tiled)
            pl.BlockSpec((1, d), lambda i: (0, 0)),    # gamma   (resident)
            pl.BlockSpec((1, d), lambda i: (0, 0)),    # beta    (resident)
            pl.BlockSpec((d, h), lambda i: (0, 0)),    # w1^T    (resident, bf16)
            pl.BlockSpec((1, h), lambda i: (0, 0)),    # b1      (resident)
            pl.BlockSpec((h, d), lambda i: (0, 0)),    # w2^T    (resident, bf16)
            pl.BlockSpec((1, d), lambda i: (0, 0)),    # b2      (resident)
        ],
        out_specs=pl.BlockSpec((tb, d), lambda i: (i, 0)),
        compiler_params=pltpu.CompilerParams(
            dimension_semantics=("parallel",),          # megacore sharding on v7x
            vmem_limit_bytes=_VMEM_LIMIT_BYTES),
    )(xr, params["gamma"], params["beta"], params["w1t"], params["b1"],
      params["w2t"], params["b2"])

    return out.reshape(orig_shape)


def feature_mixer_reference(x, gamma, beta, w1, b1, w2, b2, eps=1e-5):
    """Plain-JAX reference mirroring the PyTorch forward."""
    xf = x.astype(jnp.float32)
    mean = jnp.mean(xf, axis=-1, keepdims=True)
    var = jnp.mean((xf - mean) ** 2, axis=-1, keepdims=True)
    xn = (xf - mean) / jnp.sqrt(var + eps) * gamma + beta
    hh = jnp.maximum(xn @ w1.T.astype(jnp.float32) + b1, 0.0)
    y = hh @ w2.T.astype(jnp.float32) + b2
    return (xf + y).astype(x.dtype)


if __name__ == "__main__":
    D = 32                       # in_dim
    mlp_ratio = 1
    H = int(D * mlp_ratio)

    key = jax.random.PRNGKey(0)
    k_x, k_w1, k_w2, k_g, k_b, k_b1, k_b2 = jax.random.split(key, 7)

    # Linear weights per module init (trunc_normal std=0.02).  gamma/beta/biases are
    # given small nonzero values so the affine / bias paths are actually exercised
    # (after training they are nonzero); forward semantics do not depend on init.
    w1 = 0.02 * jax.random.truncated_normal(k_w1, -2.0, 2.0, (H, D), jnp.float32)
    w2 = 0.02 * jax.random.truncated_normal(k_w2, -2.0, 2.0, (D, H), jnp.float32)
    gamma = 1.0 + 0.1 * jax.random.normal(k_g, (D,), jnp.float32)
    beta = 0.1 * jax.random.normal(k_b, (D,), jnp.float32)
    b1 = 0.05 * jax.random.normal(k_b1, (H,), jnp.float32)
    b2 = 0.05 * jax.random.normal(k_b2, (D,), jnp.float32)

    params = prepare_feature_mixer_params(gamma, beta, w1, b1, w2, b2)

    def check(x, *, row_tile, tol):
        out = feature_mixer_forward(x, params, row_tile=row_tile)
        jax.block_until_ready(out)
        exp = feature_mixer_reference(x, gamma, beta, w1, b1, w2, b2)
        assert out.shape == x.shape and out.dtype == x.dtype
        diff = jnp.abs(out.astype(jnp.float32) - exp.astype(jnp.float32))
        assert jnp.allclose(out.astype(jnp.float32), exp.astype(jnp.float32),
                            atol=tol, rtol=tol), float(jnp.max(diff))

    # f32 input, rows an exact multiple of the tile (R = 24, TB = 24, grid = 1).
    x1 = jax.random.normal(k_x, (2, 12, D), jnp.float32)
    check(x1, row_tile=512, tol=1e-2)

    # f32 input, last row tile partially out of bounds (masked-store path).
    check(x1, row_tile=16, tol=1e-2)

    # f32 input, row count not a multiple of 8 (R = 18, TB = 8, grid = 3).
    x2 = jax.random.normal(k_x, (2, 9, D), jnp.float32)
    check(x2, row_tile=8, tol=1e-2)

    # bf16 input flowing in its native dtype end-to-end (no wrapper casts).
    check(x1.astype(jnp.bfloat16), row_tile=512, tol=2e-2)

    print("KERNEL_OK")
</pallas_src>

<mosaic_0001>
module attributes {stable_mosaic.version = 11 : i64} {
  func.func @_mixer_kernel(%arg0: i32, %arg1: memref<24x32xf32, #tpu.memory_space<vmem>>, %arg2: memref<1x32xf32, #tpu.memory_space<vmem>>, %arg3: memref<1x32xf32, #tpu.memory_space<vmem>>, %arg4: memref<32x32xbf16, #tpu.memory_space<vmem>>, %arg5: memref<1x32xf32, #tpu.memory_space<vmem>>, %arg6: memref<32x32xbf16, #tpu.memory_space<vmem>>, %arg7: memref<1x32xf32, #tpu.memory_space<vmem>>, %arg8: memref<24x32xf32, #tpu.memory_space<vmem>>) attributes {dimension_semantics = [#tpu.dimension_semantics<parallel>], iteration_bounds = array<i64: 1>, scalar_prefetch = 0 : i64, scratch_operands = 0 : i64, tpu.core_type = #tpu.core_type<tc>, window_params = [{transform_indices = @transform_0, window_bounds = array<i64: 24, 32>}, {pipeline_mode = #tpu.pipeline_mode<synchronous>, transform_indices = @transform_1, window_bounds = array<i64: 1, 32>}, {pipeline_mode = #tpu.pipeline_mode<synchronous>, transform_indices = @transform_2, window_bounds = array<i64: 1, 32>}, {pipeline_mode = #tpu.pipeline_mode<synchronous>, transform_indices = @transform_3, window_bounds = array<i64: 32, 32>}, {pipeline_mode = #tpu.pipeline_mode<synchronous>, transform_indices = @transform_4, window_bounds = array<i64: 1, 32>}, {pipeline_mode = #tpu.pipeline_mode<synchronous>, transform_indices = @transform_5, window_bounds = array<i64: 32, 32>}, {pipeline_mode = #tpu.pipeline_mode<synchronous>, transform_indices = @transform_6, window_bounds = array<i64: 1, 32>}, {transform_indices = @transform_7, window_bounds = array<i64: 24, 32>}]} {
    %c0 = arith.constant 0 : index
    %c0_0 = arith.constant 0 : index
    %0 = vector.load %arg1[%c0, %c0_0] : memref<24x32xf32, #tpu.memory_space<vmem>>, vector<24x32xf32>
    %cst = arith.constant dense<0.000000e+00> : vector<24xf32>
    %1 = vector.multi_reduction <add>, %0, %cst [1] : vector<24x32xf32> to vector<24xf32>
    %2 = vector.shape_cast %1 : vector<24xf32> to vector<24x1xf32>
    %cst_1 = arith.constant 3.125000e-02 : f32
    %3 = vector.broadcast %cst_1 : f32 to vector<24x1xf32>
    %4 = arith.mulf %2, %3 : vector<24x1xf32>
    %5 = arith.mulf %0, %0 : vector<24x32xf32>
    %cst_2 = arith.constant dense<0.000000e+00> : vector<24xf32>
    %6 = vector.multi_reduction <add>, %5, %cst_2 [1] : vector<24x32xf32> to vector<24xf32>
    %7 = vector.shape_cast %6 : vector<24xf32> to vector<24x1xf32>
    %cst_3 = arith.constant 3.125000e-02 : f32
    %8 = vector.broadcast %cst_3 : f32 to vector<24x1xf32>
    %9 = arith.mulf %7, %8 : vector<24x1xf32>
    %10 = arith.mulf %4, %4 : vector<24x1xf32>
    %11 = arith.subf %9, %10 : vector<24x1xf32>
    %cst_4 = arith.constant 0.000000e+00 : f32
    %12 = vector.broadcast %cst_4 : f32 to vector<24x1xf32>
    %13 = arith.maximumf %11, %12 : vector<24x1xf32>
    %cst_5 = arith.constant 9.99999974E-6 : f32
    %14 = vector.broadcast %cst_5 : f32 to vector<24x1xf32>
    %15 = arith.addf %13, %14 : vector<24x1xf32>
    %16 = math.rsqrt %15 : vector<24x1xf32>
    %17 = vector.broadcast %4 : vector<24x1xf32> to vector<24x32xf32>
    %18 = arith.subf %0, %17 : vector<24x32xf32>
    %19 = vector.broadcast %16 : vector<24x1xf32> to vector<24x32xf32>
    %20 = arith.mulf %18, %19 : vector<24x32xf32>
    %c0_6 = arith.constant 0 : index
    %c0_7 = arith.constant 0 : index
    %21 = vector.load %arg2[%c0_6, %c0_7] : memref<1x32xf32, #tpu.memory_space<vmem>>, vector<1x32xf32>
    %22 = vector.broadcast %21 : vector<1x32xf32> to vector<24x32xf32>
    %23 = arith.mulf %20, %22 : vector<24x32xf32>
    %c0_8 = arith.constant 0 : index
    %c0_9 = arith.constant 0 : index
    %24 = vector.load %arg3[%c0_8, %c0_9] : memref<1x32xf32, #tpu.memory_space<vmem>>, vector<1x32xf32>
    %25 = vector.broadcast %24 : vector<1x32xf32> to vector<24x32xf32>
    %26 = arith.addf %23, %25 : vector<24x32xf32>
    %27 = arith.truncf %26 : vector<24x32xf32> to vector<24x32xbf16>
    %c0_10 = arith.constant 0 : index
    %c0_11 = arith.constant 0 : index
    %28 = vector.load %arg4[%c0_10, %c0_11] : memref<32x32xbf16, #tpu.memory_space<vmem>>, vector<32x32xbf16>
    %cst_12 = arith.constant dense<0.000000e+00> : vector<24x32xf32>
    %29 = tpu.matmul %27, %28, %cst_12 {dimension_numbers = #tpu.dot_dimension_numbers<[1], [0], [0], [1], [0, 0, 1, 1], [], []>} : vector<24x32xbf16>, vector<32x32xbf16>, vector<24x32xf32> -> vector<24x32xf32>
    %c0_13 = arith.constant 0 : index
    %c0_14 = arith.constant 0 : index
    %30 = vector.load %arg5[%c0_13, %c0_14] : memref<1x32xf32, #tpu.memory_space<vmem>>, vector<1x32xf32>
    %31 = vector.broadcast %30 : vector<1x32xf32> to vector<24x32xf32>
    %32 = arith.addf %29, %31 : vector<24x32xf32>
    %cst_15 = arith.constant 0.000000e+00 : f32
    %33 = vector.broadcast %cst_15 : f32 to vector<24x32xf32>
    %34 = arith.maximumf %32, %33 : vector<24x32xf32>
    %35 = arith.truncf %34 : vector<24x32xf32> to vector<24x32xbf16>
    %c0_16 = arith.constant 0 : index
    %c0_17 = arith.constant 0 : index
    %36 = vector.load %arg6[%c0_16, %c0_17] : memref<32x32xbf16, #tpu.memory_space<vmem>>, vector<32x32xbf16>
    %cst_18 = arith.constant dense<0.000000e+00> : vector<24x32xf32>
    %37 = tpu.matmul %35, %36, %cst_18 {dimension_numbers = #tpu.dot_dimension_numbers<[1], [0], [0], [1], [0, 0, 1, 1], [], []>} : vector<24x32xbf16>, vector<32x32xbf16>, vector<24x32xf32> -> vector<24x32xf32>
    %c0_19 = arith.constant 0 : index
    %c0_20 = arith.constant 0 : index
    %38 = vector.load %arg7[%c0_19, %c0_20] : memref<1x32xf32, #tpu.memory_space<vmem>>, vector<1x32xf32>
    %39 = vector.broadcast %38 : vector<1x32xf32> to vector<24x32xf32>
    %40 = arith.addf %37, %39 : vector<24x32xf32>
    %41 = arith.addf %0, %40 : vector<24x32xf32>
    %c0_21 = arith.constant 0 : index
    %c0_22 = arith.constant 0 : index
    %42 = vector.load %arg8[%c0_21, %c0_22] : memref<24x32xf32, #tpu.memory_space<vmem>>, vector<24x32xf32>
    tpu.vector_store %arg8[%c0_21, %c0_22], %41 {strides = array<i32>} : memref<24x32xf32, #tpu.memory_space<vmem>>, vector<24x32xf32>,
    return
  }
  func.func @transform_0(%arg0: i32) -> (i32, i32) {
    %c0_i32 = arith.constant 0 : i32
    %c0_i32_0 = arith.constant 0 : i32
    return %arg0, %c0_i32 : i32, i32
  }
  func.func @transform_1(%arg0: i32) -> (i32, i32) {
    %c0_i32 = arith.constant 0 : i32
    %c0_i32_0 = arith.constant 0 : i32
    %c0_i32_1 = arith.constant 0 : i32
    return %c0_i32, %c0_i32_0 : i32, i32
  }
  func.func @transform_2(%arg0: i32) -> (i32, i32) {
    %c0_i32 = arith.constant 0 : i32
    %c0_i32_0 = arith.constant 0 : i32
    %c0_i32_1 = arith.constant 0 : i32
    return %c0_i32, %c0_i32_0 : i32, i32
  }
  func.func @transform_3(%arg0: i32) -> (i32, i32) {
    %c0_i32 = arith.constant 0 : i32
    %c0_i32_0 = arith.constant 0 : i32
    %c0_i32_1 = arith.constant 0 : i32
    return %c0_i32, %c0_i32_0 : i32, i32
  }
  func.func @transform_4(%arg0: i32) -> (i32, i32) {
    %c0_i32 = arith.constant 0 : i32
    %c0_i32_0 = arith.constant 0 : i32
    %c0_i32_1 = arith.constant 0 : i32
    return %c0_i32, %c0_i32_0 : i32, i32
  }
  func.func @transform_5(%arg0: i32) -> (i32, i32) {
    %c0_i32 = arith.constant 0 : i32
    %c0_i32_0 = arith.constant 0 : i32
    %c0_i32_1 = arith.constant 0 : i32
    return %c0_i32, %c0_i32_0 : i32, i32
  }
  func.func @transform_6(%arg0: i32) -> (i32, i32) {
    %c0_i32 = arith.constant 0 : i32
    %c0_i32_0 = arith.constant 0 : i32
    %c0_i32_1 = arith.constant 0 : i32
    return %c0_i32, %c0_i32_0 : i32, i32
  }
  func.func @transform_7(%arg0: i32) -> (i32, i32) {
    %c0_i32 = arith.constant 0 : i32
    %c0_i32_0 = arith.constant 0 : i32
    return %arg0, %c0_i32 : i32, i32
  }
}

</mosaic_0001>

<bundles_post_ra>
// kernel: tpu_custom_call.1
= control target key start
LH: loop header
LB: loop body
LE: loop exit
PB: predicated region body
PF: predicated region fallthrough
CT: control target
= control target key end

     0   :  { %12 = vsyncpa [#allocation3], 0  ;;  %s578_s0 = inlined_call_operand.hbm [shape: f32[24,32], index: 0, kind: input, shape index: {}]   ;;  %s579_s1 = inlined_call_operand.vmem [shape: f32[1,32], index: 1, kind: input, shape index: {}]   ;;  %s580_s2 = inlined_call_operand.vmem [shape: f32[1,32], index: 2, kind: input, shape index: {}]   ;;  %s581_s3 = inlined_call_operand.hbm [shape: bf16[32,32], index: 3, kind: input, shape index: {}]   ;;  %s582_s4 = inlined_call_operand.vmem [shape: f32[1,32], index: 4, kind: input, shape index: {}]   ;;  %s583_s5 = inlined_call_operand.hbm [shape: bf16[32,32], index: 5, kind: input, shape index: {}]   ;;  %s584_s6 = inlined_call_operand.vmem [shape: f32[1,32], index: 6, kind: input, shape index: {}]   ;;  %s585_s7 = inlined_call_operand.hbm [shape: f32[24,32], index: 7, kind: output, shape index: {}]  }
   0x1   :  { %13 = vsyncpa [#allocation6], 0 }
   0x2   :  { %14 = vsyncpa [#allocation4], 0  ;;  %s466_s24 = smov [#allocation5]  }
   0x3   :  { %s36_s25 = sshll.u32 %s466_s24, 4  ;;  %s37_s25 = int_to_ptr.vmem [resolvable:$true] %s36_s25 }
   0x4   :  { %s388_s26 = scalar_lea.vmem %s37_s25, 256  ;;  %p393_p1 = scmp.lt.s32.totalorder %s37_s25, %s37_s25 }
   0x5   :  { %p389_p0 = scmp.ne.s32.totalorder %s37_s25, %s388_s26  ;;  %p394_p2 = scmp.lt.s32.totalorder %s388_s26, %s388_s26 }
   0x7   :  { %p395_p3 = por %p394_p2, %p393_p1 }
   0x9   :  { %p396_p4 = pnand %p395_p3, %p389_p0 }
   0xb   :  { %399 = shalt.err (!%p396_p4)
}
   0xc   :  { %s467_s27 = smov 64   ;;  %s468_s28 = smov 4  }
   0xd   :  { %42 = dma.hbm_to_vmem [thread:$0]  %s581_s3, 256, %s37_s25, [#allocation6], %s467_s27, %s467_s27, %s468_s28  }
   0xe   :  { %s469_s8 = smov [#allocation2]  }
   0xf   :  { %s20_s9 = sshll.u32 %s469_s8, 4  ;;  %s21_s9 = int_to_ptr.vmem [resolvable:$true] %s20_s9 }
  0x10   :  { %s408_s10 = scalar_lea.vmem %s21_s9, 384  ;;  %p413_p6 = scmp.lt.s32.totalorder %s21_s9, %s21_s9 }
  0x11   :  { %p409_p5 = scmp.ne.s32.totalorder %s21_s9, %s408_s10  ;;  %p414_p7 = scmp.lt.s32.totalorder %s408_s10, %s408_s10 }
  0x13   :  { %p415_p8 = por %p414_p7, %p413_p6 }
  0x15   :  { %p416_p9 = pnand %p415_p8, %p409_p5 }
  0x17   :  { %419 = shalt.err (!%p416_p9)
}
  0x18   :  { %s470_s11 = smov 128   ;;  %s471_s12 = smov 8  }
  0x19   :  { %26 = dma.hbm_to_vmem [thread:$0]  %s578_s0, 384, %s21_s9, [#allocation3], %s470_s11, %s470_s11, %s471_s12  }
  0x1a   :  { %s472_s3 = smov [#allocation7]  }
  0x1b   :  { %s50_s15 = sshll.u32 %s472_s3, 4  ;;  %s51_s15 = int_to_ptr.vmem [resolvable:$true] %s50_s15 }
  0x1c   :  { %s428_s16 = scalar_lea.vmem %s51_s15, 256  ;;  %p433_p11 = scmp.lt.s32.totalorder %s51_s15, %s51_s15 }
  0x1d   :  { %p429_p10 = scmp.ne.s32.totalorder %s51_s15, %s428_s16  ;;  %p434_p12 = scmp.lt.s32.totalorder %s428_s16, %s428_s16 }
  0x1f   :  { %p435_p13 = por %p434_p12, %p433_p11 }
  0x21   :  { %p436_p0 = pnand %p435_p13, %p429_p10 }
  0x23   :  { %439 = shalt.err (!%p436_p0)
}
  0x24   :  { %56 = dma.hbm_to_vmem [thread:$0]  %s583_s5, 256, %s51_s15, [#allocation6], %s467_s27, %s467_s27, %s468_s28  }
  0x25   :  { %460 = dma.done.wait [#allocation3], 384  }
  0x26   :  { %461 = vsyncadd [#allocation3], 4294966912 }
  0x27   :  { %462 = dma.done.wait [#allocation6], 512  }
  0x28   :  { %463 = vsyncadd [#allocation6], 4294966784  ;;  %vm72_vm0 = vcmask 261120   ;;  %v526_v0 = vld [vmem:[#allocation2 + $0x10] sm:$0xff]  ;;  %v528_v1 = vld [vmem:[#allocation2] sm:$0xff] }
  0x29   :  { %v530_v2 = vld [vmem:[#allocation2 + $0x8] sm:$0xff]  ;;  %v79_v3 = vsel %vm72_vm0, %v526_v0, 0.0  ;;  %v73_v4 = vsel %vm72_vm0, %v528_v1, 0.0  ;;  %v85_v5 = vmul.f32 %v528_v1, %v528_v1  ;;  %v87_v8 = vmul.f32 %v526_v0, %v526_v0  ;;  %v370_v12 = vld [vmem:[#allocation5 + $0x8] sm:$0xff]   ;;  %v371_v13 = vld [vmem:[#allocation5] sm:$0xff]  }
  0x2a   :  { %80 = vadd.xlane.f32.xlu1 %v79_v3  ;;  %74 = vadd.xlane.f32.xlu0 %v73_v4  ;;  %v76_v7 = vsel %vm72_vm0, %v530_v2, 0.0  ;;  %v86_v9 = vmul.f32 %v530_v2, %v530_v2  ;;  %v326_v42 = vld [vmem:[%s579_s1] ss:$0 sm:$0xff]  ;;  %v372_v57 = vld [vmem:[#allocation7 + $0x8] sm:$0xff]   ;;  %v373_v58 = vld [vmem:[#allocation7] sm:$0xff]  }
  0x2b   :  { %v88_v6 = vsel %vm72_vm0, %v85_v5, 0.0  ;;  %v94_v10 = vsel %vm72_vm0, %v87_v8, 0.0  ;;  %346 = vmatprep.subr.bf16.mxu0 %v370_v12  ;;  %v327_v49 = vld [vmem:[%s580_s2] ss:$0 sm:$0xff]  ;;  %354 = vmatprep.subr.bf16.mxu1 %v372_v57 }
  0x2c   :  { %v91_v11 = vsel %vm72_vm0, %v86_v9, 0.0  ;;  %347 = vmatpush3.bf16.msra.mxu0 %v370_v12  ;;  %355 = vmatpush3.bf16.msra.mxu1 %v372_v57  ;;  %v328_v60 = vld [vmem:[%s582_s4] ss:$0 sm:$0xff]  ;;  %s473_s4 = smov [#allocation8]  }
  0x2d   :  { %348 = vmatprep.subr.bf16.mxu0 %v371_v13  ;;  %356 = vmatprep.subr.bf16.mxu1 %v373_v58  ;;  %s313_s23 = sshll.u32 %s473_s4, 4  ;;  %s314_s23 = int_to_ptr.vmem [resolvable:$true] %s313_s23 }
  0x2e   :  { %89 = vadd.xlane.f32.xlu1 %v88_v6  ;;  %77 = vadd.xlane.f32.xlu0 %v76_v7  ;;  %p445_p2 = scmp.lt.s32.totalorder %s314_s23, %s314_s23 }
  0x30   :  { %349 = vmatpush3.bf16.msra.mxu0 %v371_v13  ;;  %357 = vmatpush3.bf16.msra.mxu1 %v373_v58 }
  0x32   :  { %95 = vadd.xlane.f32.xlu1 %v94_v10  ;;  %92 = vadd.xlane.f32.xlu0 %v91_v11  ;;  %v333_v11 = vld [vmem:[%s584_s6] ss:$0 sm:$0xff]  ;;  %s440_s6 = scalar_lea.vmem %s314_s23, 384 }
  0x33   :  { %p441_p1 = scmp.ne.s32.totalorder %s314_s23, %s440_s6  ;;  %p446_p3 = scmp.lt.s32.totalorder %s440_s6, %s440_s6 }
  0x35   :  { %p447_p4 = por %p446_p3, %p445_p2 }
  0x37   :  { %p448_p5 = pnand %p447_p4, %p441_p1 }
  0xb3   :  { %v81_v14 = vpop.xlane.xlu1 %80  ;;  %v75_v15 = vpop.xlane.xlu0 %74 }
  0xb4   :  { %v82_v16 = vmul.f32 0.03125, %v75_v15  ;;  %v84_v17 = vmul.f32 0.03125, %v81_v14 }
  0xb6   :  { %v100_v20 = vmul.f32 %v82_v16, %v82_v16  ;;  %v102_v24 = vmul.f32 %v84_v17, %v84_v17  ;;  %v115_v39 = vsub.f32 %v528_v1, %v82_v16  ;;  %v117_v41 = vsub.f32 %v526_v0, %v84_v17 }
  0xb7   :  { %v90_v18 = vpop.xlane.xlu1 %89  ;;  %v78_v19 = vpop.xlane.xlu0 %77 }
  0xb8   :  { %v97_v21 = vmul.f32 0.03125, %v90_v18  ;;  %v83_v22 = vmul.f32 0.03125, %v78_v19 }
  0xba   :  { %v103_v23 = vsub.f32 %v97_v21, %v100_v20  ;;  %v101_v28 = vmul.f32 %v83_v22, %v83_v22  ;;  %v116_v44 = vsub.f32 %v530_v2, %v83_v22 }
  0xbb   :  { %v96_v25 = vpop.xlane.xlu1 %95  ;;  %v93_v26 = vpop.xlane.xlu0 %92 }
  0xbc   :  { %v106_v27 = vmax.f32 %v103_v23, 0.0  ;;  %v99_v29 = vmul.f32 0.03125, %v96_v25  ;;  %v98_v30 = vmul.f32 0.03125, %v93_v26 }
  0xbe   :  { %v109_v31 = vadd.f32 1e-05, %v106_v27  ;;  %v105_v32 = vsub.f32 %v99_v29, %v102_v24  ;;  %v104_v33 = vsub.f32 %v98_v30, %v101_v28 }
  0xc0   :  { %374 = vrsqrt.f32 %v109_v31  ;;  %v108_v34 = vmax.f32 %v105_v32, 0.0  ;;  %v107_v35 = vmax.f32 %v104_v33, 0.0 }
  0xc2   :  { %v111_v36 = vadd.f32 1e-05, %v108_v34  ;;  %v110_v37 = vadd.f32 1e-05, %v107_v35 }
  0xc4   :  { %376 = vrsqrt.f32 %v111_v36 }
  0xc5   :  { %378 = vrsqrt.f32 %v110_v37 }
  0xcd   :  { %v375_v38 = vpop.eup %374 }
  0xce   :  { %v118_v40 = vmul.f32 %v375_v38, %v115_v39 }
  0xd0   :  { %v128_v48 = vmul.f32 %v326_v42, %v118_v40 }
  0xd1   :  { %v377_v43 = vpop.eup %376 }
  0xd2   :  { %v379_v45 = vpop.eup %378  ;;  %v120_v46 = vmul.f32 %v377_v43, %v117_v41  ;;  %v138_v53 = vadd.f32 %v327_v49, %v128_v48 }
  0xd3   :  { %v119_v47 = vmul.f32 %v379_v45, %v116_v44 }
  0xd4   :  { %v130_v50 = vmul.f32 %v326_v42, %v120_v46 }
  0xd5   :  { %v129_v51 = vmul.f32 %v326_v42, %v119_v47 }
  0xd6   :  { %v140_v52 = vadd.f32 %v327_v49, %v130_v50 }
  0xd7   :  { %v139_v54 = vadd.f32 %v327_v49, %v129_v51 }
  0xd8   :  { %v142_v55 = vpack.c.bf16 %v140_v52, %v140_v52 }
  0xd9   :  { %v141_v56 = vpack.c.bf16 %v139_v54, %v138_v53 }
  0xdb   :  { %350 = vmatprep.mubr.msk.bf16.mxu0 %vm72_vm0, %v141_v56 }
  0xdc   :  { %351 = vmatmul.mubr.msk.bf16.vlgmr.msra.gmra.mxu0 %vm72_vm0, %v142_v55 }
 0x19c   :  { %v352_v59 = vpop.f32.mrf.mxu0 }
 0x19d   :  { %v215_v62 = vadd.f32 %v352_v59, %v328_v60 }
 0x19e   :  { %v206_v61 = vpop.f32.mrf.mxu0 }
 0x19f   :  { %v207_v3 = vadd.f32 %v328_v60, %v206_v61  ;;  %v222_v6 = vmax.f32 %v215_v62, 0.0 }
 0x1a0   :  { %v353_v63 = vpop.f32.mrf.mxu0 }
 0x1a1   :  { %v220_v7 = vmax.f32 %v207_v3, 0.0  ;;  %v224_v10 = vpack.c.bf16 %v222_v6, %v222_v6 }
 0x1a2   :  { %v209_v4 = vpop.f32.mrf.mxu0 }
 0x1a3   :  { %v210_v5 = vadd.f32 %v328_v60, %v209_v4 }
 0x1a5   :  { %v221_v8 = vmax.f32 %v210_v5, 0.0 }
 0x1a7   :  { %v223_v9 = vpack.c.bf16 %v221_v8, %v220_v7 }
 0x1a9   :  { %358 = vmatprep.mubr.msk.bf16.mxu1 %vm72_vm0, %v223_v9 }
 0x1aa   :  { %359 = vmatmul.mubr.msk.bf16.vlgmr.msra.gmra.mxu1 %vm72_vm0, %v224_v10 }
 0x26a   :  { %v360_v12 = vpop.f32.mrf.mxu1 }
 0x26b   :  { %v297_v13 = vadd.f32 %v360_v12, %v333_v11 }
 0x26c   :  { %v288_v14 = vpop.f32.mrf.mxu1 }
 0x26d   :  { %v304_v15 = vadd.f32 %v297_v13, %v526_v0  ;;  %v289_v16 = vadd.f32 %v333_v11, %v288_v14 }
 0x26e   :  { %v361_v17 = vpop.f32.mrf.mxu1 }
 0x26f   :  { %307 = vst.msk [vmem:[#allocation8 + $0x10] sm:$0xff] %vm72_vm0, %v304_v15  ;;  %v302_v18 = vadd.f32 %v289_v16, %v528_v1 }
 0x270   :  { %v291_v19 = vpop.f32.mrf.mxu1 }
 0x271   :  { %305 = vst.msk [vmem:[#allocation8] sm:$0xff] %vm72_vm0, %v302_v18  ;;  %v292_v20 = vadd.f32 %v333_v11, %v291_v19 }
 0x273   :  { %v303_v21 = vadd.f32 %v292_v20, %v530_v2 }
 0x275   :  { %306 = vst.msk [vmem:[#allocation8 + $0x8] sm:$0xff] %vm72_vm0, %v303_v21 }
 0x276   :  { %451 = shalt.err (!%p448_p5)
}
 0x277   :  { %319 = dma.vmem_to_hbm [thread:$0]  %s314_s23, 384, %s585_s7, [#allocation4], %s470_s11, %s470_s11, %s471_s12  }
 0x278   :  { %464 = dma.done.wait [#allocation4], 384  }
 0x279   :  { %465 = vsyncadd [#allocation4], 4294966912 }
 0x27a   :  { %323 = vsyncpa [#allocation3], 1 }
 0x27b   :  { %324 = vsyncpa [#allocation6], 1 }
 0x27c   :  { %325 = vsyncpa [#allocation4], 1 }

</bundles_post_ra>
